<compile_context>
chip_gen: v7x
topology: tpu7x:2x2x1
jax: 0.10.0
libtpu: 0.0.40
codegen_flags: <defaults>
</compile_context>

<pallas_src>
import functools

import jax
import jax.numpy as jnp
from jax.experimental import pallas as pl
from jax.experimental.pallas import tpu as pltpu


def _round_up(v, m):
    return (v + m - 1) // m * m


def _vmem_capacity_bytes():
    """Physical VMEM per TensorCore; conservative (v7x-sized) fallback."""
    try:
        cap = int(getattr(pltpu.get_tpu_info(), "vmem_capacity_bytes", 0))
        if cap > 0:
            return cap
    except Exception:
        pass
    return 64 * 1024 * 1024


def _ls_ce_kernel(x_ref, t_ref, out_ref, *, smoothing, n_rows):
    """One batch tile: per-row label-smoothed CE loss, shape (tile_m, 1)."""
    confidence = 1.0 - smoothing

    x = x_ref[...].astype(jnp.float32)          # (TM, C) -- full class dim
    t = t_ref[...]                              # (TM, 1) int32
    tile_m, c = x.shape

    # Numerically-stable logsumexp pieces (logprobs never materialized).
    m = jnp.max(x, axis=-1, keepdims=True)                              # (TM,1)
    lse = jnp.log(jnp.sum(jnp.exp(x - m), axis=-1, keepdims=True))      # (TM,1)

    # Fused weighted reduction:
    #   w_j  = smoothing/C + confidence * [j == target]
    #   loss = (m + lse) - sum_j x_j * w_j
    #        = confidence*((m+lse) - x[t]) + smoothing*((m+lse) - sum(x)/C)
    cls_ids = jax.lax.broadcasted_iota(jnp.int32, x.shape, 1)
    smooth_w = smoothing / c
    w = jnp.where(cls_ids == t, confidence + smooth_w, smooth_w)        # (TM,C)
    wsum = jnp.sum(x * w, axis=-1, keepdims=True)                       # (TM,1)

    loss = (m + lse) - wsum

    # Ragged trailing block: rows >= N hold unspecified data; zero them so the
    # (discarded) VMEM rows never carry NaN/Inf.  Their HBM writeback is
    # clipped by Pallas regardless.
    row0 = pl.program_id(0) * tile_m
    row_ids = row0 + jax.lax.broadcasted_iota(jnp.int32, loss.shape, 0)
    out_ref[...] = jnp.where(row_ids < n_rows, loss, 0.0)


def label_smoothing_cross_entropy(x, target, smoothing=0.1, *, tile_m=None):
    """x: (N, C) float logits, target: (N,) int labels -> scalar mean loss."""
    N, C = x.shape
    itemsize = jnp.dtype(x.dtype).itemsize

    # Chip-aware scoped-VMEM plan: 64 MiB on 128 MiB chips (v5e/v6e),
    # 32 MiB on 64 MiB-per-TC chips (v7x).
    vmem_cap = _vmem_capacity_bytes()
    vmem_limit = int(min(vmem_cap // 2, 64 * 1024 * 1024))

    if tile_m is None:
        # Double-buffered logits input (2 tiles in flight) + ~3 live full-width
        # f32 temps after the fused-reduce change.
        budget = (vmem_limit * 3) // 4
        per_row_bytes = C * (2 * itemsize + 3 * 4)
        tile_m = max(8, min((budget // per_row_bytes) // 8 * 8, 2048))
        # Guarantee >= 2 grid tiles when the batch allows it so both v7x
        # TensorCores get work (harmless on single-TC v5e/v6e); also never
        # bigger than the (row-aligned) batch.
        tile_m = min(int(tile_m), _round_up(max(-(-N // 2), 1), 8))
        tile_m = max(8, tile_m)
    tile_m = int(tile_m)
    assert tile_m % 8 == 0, "tile_m must be a multiple of 8"

    num_tiles = pl.cdiv(N, tile_m)

    targets = target.astype(jnp.int32).reshape(N, 1)

    kernel = functools.partial(_ls_ce_kernel,
                               smoothing=float(smoothing), n_rows=N)

    per_row_loss = pl.pallas_call(
        kernel,
        out_shape=jax.ShapeDtypeStruct((N, 1), jnp.float32),
        grid_spec=pltpu.PrefetchScalarGridSpec(
            num_scalar_prefetch=0,
            grid=(num_tiles,),
            in_specs=[
                pl.BlockSpec((tile_m, C), lambda i: (i, 0)),   # full class dim
                pl.BlockSpec((tile_m, 1), lambda i: (i, 0)),
            ],
            out_specs=pl.BlockSpec((tile_m, 1), lambda i: (i, 0)),
        ),
        compiler_params=pltpu.CompilerParams(
            dimension_semantics=("parallel",),
            vmem_limit_bytes=vmem_limit),
        cost_estimate=pl.CostEstimate(
            flops=6 * N * C,
            transcendentals=N * C,
            bytes_accessed=N * C * itemsize + N * 8),
    )(x, targets)

    # Mean over the true N rows (no padded rows exist; no slice needed).
    return jnp.sum(per_row_loss) / jnp.float32(N)


def _reference(x, target, smoothing=0.1):
    confidence = 1.0 - smoothing
    logprobs = jax.nn.log_softmax(x.astype(jnp.float32), axis=-1)
    nll = -jnp.take_along_axis(logprobs, target[:, None].astype(jnp.int32),
                               axis=-1)[:, 0]
    smooth = -jnp.mean(logprobs, axis=-1)
    return jnp.mean(confidence * nll + smoothing * smooth)


if __name__ == "__main__":
    key = jax.random.PRNGKey(0)
    kx, kt = jax.random.split(key)
    # batch not a tile multiple and classes not 128-aligned: exercises both
    # the ragged trailing block and the unpadded-lane path.
    N, C = 18, 32
    x = jax.random.normal(kx, (N, C), dtype=jnp.float32)
    target = jax.random.randint(kt, (N,), 0, C, dtype=jnp.int32)

    loss = label_smoothing_cross_entropy(x, target, smoothing=0.1)
    loss = jax.block_until_ready(loss)

    ref = _reference(x, target, smoothing=0.1)
    assert jnp.allclose(loss, ref, atol=1e-5, rtol=1e-5), (loss, ref)

    print("KERNEL_OK")
</pallas_src>

<mosaic_0001>
module attributes {stable_mosaic.version = 11 : i64} {
  func.func @_ls_ce_kernel(%arg0: i32, %arg1: memref<16x32xf32, #tpu.memory_space<vmem>>, %arg2: memref<16x1xi32, #tpu.memory_space<vmem>>, %arg3: memref<16x1xf32, #tpu.memory_space<vmem>>) attributes {dimension_semantics = [#tpu.dimension_semantics<parallel>], iteration_bounds = array<i64: 2>, scalar_prefetch = 0 : i64, scratch_operands = 0 : i64, tpu.core_type = #tpu.core_type<tc>, window_params = [{transform_indices = @transform_0, window_bounds = array<i64: 16, 32>}, {transform_indices = @transform_1, window_bounds = array<i64: 16, 1>}, {transform_indices = @transform_2, window_bounds = array<i64: 16, 1>}]} {
    %c0 = arith.constant 0 : index
    %c0_0 = arith.constant 0 : index
    %0 = vector.load %arg1[%c0, %c0_0] : memref<16x32xf32, #tpu.memory_space<vmem>>, vector<16x32xf32>
    %c0_1 = arith.constant 0 : index
    %c0_2 = arith.constant 0 : index
    %1 = vector.load %arg2[%c0_1, %c0_2] : memref<16x1xi32, #tpu.memory_space<vmem>>, vector<16x1xi32>
    %cst = arith.constant dense<0xFF800000> : vector<16xf32>
    %2 = vector.multi_reduction <maximumf>, %0, %cst [1] : vector<16x32xf32> to vector<16xf32>
    %3 = vector.shape_cast %2 : vector<16xf32> to vector<16x1xf32>
    %4 = vector.broadcast %3 : vector<16x1xf32> to vector<16x32xf32>
    %5 = arith.subf %0, %4 : vector<16x32xf32>
    %6 = math.exp %5 : vector<16x32xf32>
    %cst_3 = arith.constant dense<0.000000e+00> : vector<16xf32>
    %7 = vector.multi_reduction <add>, %6, %cst_3 [1] : vector<16x32xf32> to vector<16xf32>
    %8 = vector.shape_cast %7 : vector<16xf32> to vector<16x1xf32>
    %9 = math.log %8 : vector<16x1xf32>
    %10 = tpu.iota {dimensions = array<i32: 1>} : vector<16x32xi32>
    %11 = vector.broadcast %1 : vector<16x1xi32> to vector<16x32xi32>
    %12 = arith.cmpi eq, %10, %11 : vector<16x32xi32>
    %cst_4 = arith.constant 0.903124988 : f32
    %cst_5 = arith.constant 3.125000e-03 : f32
    %13 = vector.broadcast %cst_4 : f32 to vector<16x32xf32>
    %14 = vector.broadcast %cst_5 : f32 to vector<16x32xf32>
    %15 = arith.select %12, %13, %14 : vector<16x32xi1>, vector<16x32xf32>
    %16 = arith.mulf %0, %15 : vector<16x32xf32>
    %cst_6 = arith.constant dense<0.000000e+00> : vector<16xf32>
    %17 = vector.multi_reduction <add>, %16, %cst_6 [1] : vector<16x32xf32> to vector<16xf32>
    %18 = vector.shape_cast %17 : vector<16xf32> to vector<16x1xf32>
    %19 = arith.addf %3, %9 : vector<16x1xf32>
    %20 = arith.subf %19, %18 : vector<16x1xf32>
    %c16_i32 = arith.constant 16 : i32
    %21 = arith.muli %arg0, %c16_i32 : i32
    %22 = tpu.iota {dimensions = array<i32: 0>} : vector<16x1xi32>
    %23 = vector.broadcast %21 : i32 to vector<16x1xi32>
    %24 = arith.addi %23, %22 : vector<16x1xi32>
    %c18_i32 = arith.constant 18 : i32
    %25 = vector.broadcast %c18_i32 : i32 to vector<16x1xi32>
    %26 = arith.cmpi slt, %24, %25 : vector<16x1xi32>
    %cst_7 = arith.constant 0.000000e+00 : f32
    %27 = vector.broadcast %cst_7 : f32 to vector<16x1xf32>
    %28 = arith.select %26, %20, %27 : vector<16x1xi1>, vector<16x1xf32>
    %c0_8 = arith.constant 0 : index
    %c0_9 = arith.constant 0 : index
    %29 = vector.load %arg3[%c0_8, %c0_9] : memref<16x1xf32, #tpu.memory_space<vmem>>, vector<16x1xf32>
    tpu.vector_store %arg3[%c0_8, %c0_9], %28 {strides = array<i32>} : memref<16x1xf32, #tpu.memory_space<vmem>>, vector<16x1xf32>,
    return
  }
  func.func @transform_0(%arg0: i32) -> (i32, i32) {
    %c0_i32 = arith.constant 0 : i32
    %c0_i32_0 = arith.constant 0 : i32
    return %arg0, %c0_i32 : i32, i32
  }
  func.func @transform_1(%arg0: i32) -> (i32, i32) {
    %c0_i32 = arith.constant 0 : i32
    %c0_i32_0 = arith.constant 0 : i32
    return %arg0, %c0_i32 : i32, i32
  }
  func.func @transform_2(%arg0: i32) -> (i32, i32) {
    %c0_i32 = arith.constant 0 : i32
    %c0_i32_0 = arith.constant 0 : i32
    return %arg0, %c0_i32 : i32, i32
  }
}

</mosaic_0001>

<bundles_post_ra>
// kernel: tpu_custom_call.1
= control target key start
LH: loop header
LB: loop body
LE: loop exit
PB: predicated region body
PF: predicated region fallthrough
CT: control target
= control target key end

     0   :  { %s738_s9 = smov 0   ;;  %s740_s10 = smov 0   ;;  %s830_s0 = inlined_call_operand.vmem [shape: f32[18,32], index: 0, kind: input, shape index: {}]   ;;  %s831_s1 = inlined_call_operand.vmem [shape: s32[18,1], index: 1, kind: input, shape index: {}]   ;;  %s832_s2 = inlined_call_operand.vmem [shape: f32[18,1], index: 2, kind: output, shape index: {}]  }
   0x1   :  { %s742_s11 = smov 0  }
   0x2 LB: > { %s751_s12 = sadd.s32 4294967295, %s687_s11   ;;  %s753_s13 = sadd.s32 1, %s687_s11   ;;  %s687_s11 = sphi %s742_s11, %s836_s11   ;;  %s683_s10 = sphi %s740_s10, %s835_s10   ;;  %s679_s9 = sphi %s738_s9, %s834_s9  }
   0x3   : > { %s68_s14 = ssub.s32 %s687_s11, %s753_s13  ;;  %s71_s15 = sadd.s32 1, %s683_s10 }
   0x4   : > { %p69_p0 = scmp.eq.s32.totalorder %s68_s14, 0  ;;  %p81_p1 = scmp.ne.s32.totalorder %s683_s10, %s679_s9 }
   0x5   : > { %p82_p2 = scmp.eq.s32.totalorder %s751_s12, 1  ;;  %p506_p3 = scmp.ge.s32.totalorder %s687_s11, 1 }
   0x6   : > { %s761_s16 = scalar_select %p69_p0, %s683_s10, %s71_s15  }
   0x7   : > { %p763_p4 = por %p82_p2, %p81_p1  ;;  %p140_p5 = scmp.lt.s32.totalorder %s687_s11, 3 }
   0x9   : > { %p141_p6 = pnand %p506_p3, %p140_p5 }
   0xa   : > { %s768_s18 = sshll.u32 (!%p141_p6), %s751_s12, 1  ;;  %v721_v0 = vmov (!%p141_p6), 0   ;;  %vm211_vm0 = vcmask (!%p141_p6), 261120   ;;  %v234_v8 = vlaneseq (!%p141_p6)  ;;  %v722_v17 = vmov (!%p141_p6), 0.003125   ;;  %s512_s27 = sshll.u32 (!%p141_p6), %s751_s12, 4 }
   0xb   : > { %144 = sbr.rel (%p141_p6) target bundleno = 396 (0x18c), region = 28  ;;  %p179_p7 = scmp.lt.s32.totalorder (!%p141_p6), %s768_s18, 2  ;;  %623 = vset.pattern.permute.xlu1 (!%p141_p6), %v721_v0  ;;  %624 = vset.pattern.permute.xlu0 (!%p141_p6), %v721_v0  ;;  %v262_v31 = vstv (!%p141_p6), %s512_s27  ;;  %vm269_vm4 = vcmask (!%p141_p6), 7168  }
   0xc   : > { %v235_v13 = vand.u32 (!%p141_p6), 127, %v234_v8  ;;  %v260_v30 = vshrl.u32 (!%p141_p6), %v234_v8, 7  ;;  %s171_s28 = sand.u32 (!%p141_p6), 1, %s679_s9  }
   0xd   : > { %s507_s29 = sshll.u32 (!%p141_p6), %s171_s28, 4 }
   0xe   : > { %v263_v33 = vadd.s32 (!%p141_p6), %v262_v31, %v260_v30  ;;  %v261_v34 = vadd.s32 (!%p141_p6), 8, %v260_v30  ;;  %s786_s30 = scalar_lea.vmem (!%p141_p6), [#allocation2], %s507_s29  }
  0x10   : > { %vm265_vm3 = vcmp.lt.s32.totalorder (!%p141_p6), %v263_v33, 18  ;;  %v264_v39 = vadd.s32 (!%p141_p6), %v262_v31, %v261_v34 }
  0x12   : > { %s180_s19 = scalar_select %p179_p7, %s768_s18, 2  ;;  %vm266_vm5 = vcmp.lt.s32.totalorder %v264_v39, 18 }
  0x13   : > { %s280_s3 = ssub.s32 (%p763_p4), 3, %s768_s18  ;;  %s796_s6 = scalar_lea.vmem (%p763_p4), %s832_s2, %s512_s27  }
  0x14   : > { %s509_s20 = sshll.u32 %s180_s19, 3  ;;  %p281_p8 = scmp.lt.s32.totalorder (%p763_p4), %s280_s3, 2 }
  0x15   : > { %s182_s23 = scalar_lea.vmem %s830_s0, %s509_s20  ;;  %s196_s26 = scalar_lea.vmem %s831_s1, %s509_s20 }
  0x16   : > { %v207_v1 = vld [vmem:[%s182_s23] sm:$0xff]  ;;  %v208_v2 = vld [vmem:[%s182_s23 + $0x8] sm:$0xff] }
  0x17   : > { %v209_v3 = vld [vmem:[%s196_s26] sm:$0xff]  ;;  %v212_v4 = vsel %vm211_vm0, %v207_v1, -inf  ;;  %v210_v5 = vld [vmem:[%s196_s26 + $0x8] sm:$0xff]  ;;  %v215_v6 = vsel %vm211_vm0, %v208_v2, -inf }
  0x18   : > { %237 = vperm.xlu1 %623, %v209_v3   ;;  %213 = vmax.xlane.f32.xlu0 %v212_v4 }
  0x1c   : > { %240 = vperm.xlu1 %623, %v210_v5   ;;  %216 = vmax.xlane.f32.xlu0 %v215_v6 }
  0x97   : > { %v238_v11 = vpop.permute.xlu1 %237 }
  0x98   : > { %vm242_vm1 = vcmp.eq.s32.totalorder %v235_v13, %v238_v11 }
  0x99   : > { %v244_v18 = vsel %vm242_vm1, 0.903125, %v722_v17 }
  0x9a   : > { %v246_v19 = vmul.f32 %v244_v18, %v207_v1 }
  0x9b   : > { %v241_v16 = vpop.permute.xlu1 %240 }
  0x9c   : > { %vm243_vm2 = vcmp.eq.s32.totalorder %v235_v13, %v241_v16  ;;  %v248_v23 = vsel %vm211_vm0, %v246_v19, 0.0 }
  0x9d   : > { %v245_v21 = vsel %vm243_vm2, 0.903125, %v722_v17 }
  0x9e   : > { %v247_v24 = vmul.f32 %v245_v21, %v208_v2 }
  0xa0   : > { %v251_v27 = vsel %vm211_vm0, %v247_v24, 0.0 }
  0xa5   : > { %v214_v7 = vpop.xlane.xlu0 %213 }
  0xa6   : > { %v218_v9 = vsub.f32 %v207_v1, %v214_v7 }
  0xa8   : > { %v220_v10 = vmul.f32 1.442695, %v218_v9 }
  0xa9   : > { %v217_v12 = vpop.xlane.xlu0 %216 }
  0xaa   : > { %625 = vpow2.f32 %v220_v10  ;;  %v219_v14 = vsub.f32 %v208_v2, %v217_v12 }
  0xac   : > { %v222_v15 = vmul.f32 1.442695, %v219_v14 }
  0xae   : > { %627 = vpow2.f32 %v222_v15 }
  0xb4   : > { %v626_v20 = vpop.eup %625 }
  0xb5   : > { %v224_v22 = vsel %vm211_vm0, %v626_v20, 0.0 }
  0xb6   : > { %225 = vadd.xlane.f32.xlu0 %v224_v22 }
  0xb8   : > { %v628_v25 = vpop.eup %627 }
  0xb9   : > { %v227_v26 = vsel %vm211_vm0, %v628_v25, 0.0 }
  0xba   : > { %228 = vadd.xlane.f32.xlu1 %v227_v26  ;;  %249 = vadd.xlane.f32.xlu0 %v248_v23 }
  0xbe   : > { %252 = vadd.xlane.f32.xlu0 %v251_v27 }
 0x143   : > { %v226_v28 = vpop.xlane.xlu0 %225 }
 0x144   : > { %629 = vlog2.f32 %v226_v28 }
 0x147   : > { %v229_v29 = vpop.xlane.xlu1 %228  ;;  %v250_v36 = vpop.xlane.xlu0 %249 }
 0x148   : > { %631 = vlog2.f32 %v229_v29 }
 0x14b   : > { %v253_v44 = vpop.xlane.xlu0 %252 }
 0x14e   : > { %v630_v32 = vpop.eup %629 }
 0x14f   : > { %v231_v35 = vmul.f32 0.6931472, %v630_v32 }
 0x151   : > { %v254_v37 = vadd.f32 %v231_v35, %v214_v7 }
 0x152   : > { %v632_v38 = vpop.eup %631 }
 0x153   : > { %v233_v40 = vmul.f32 0.6931472, %v632_v38  ;;  %v256_v41 = vsub.f32 %v254_v37, %v250_v36 }
 0x154   : > { %278 = sbr.rel (!%p763_p4) target bundleno = 396 (0x18c), region = 32 }
 0x155   : > { %v267_v42 = vsel %vm265_vm3, %v256_v41, 0.0  ;;  %v255_v43 = vadd.f32 %v233_v40, %v217_v12 }
 0x156   : > { %270 = vst.msk [vmem:[%s786_s30] sm:$0xff] %vm269_vm4, %v267_v42 }
 0x157   : > { %v257_v45 = vsub.f32 %v255_v43, %v253_v44 }
 0x159   : > { %v268_v46 = vsel %vm266_vm5, %v257_v45, 0.0 }
 0x15a   : > { %271 = vst.msk [vmem:[%s786_s30 + $0x8] sm:$0xff] %vm269_vm4, %v268_v46 }
 0x15b   : > { %s838_s3 = smov (!%p281_p8, %s280_s3), 2 }
 0x15c   : > { %s515_s7 = sshll.u32 %s838_s3, 7 }
 0x15d   : > { %p518_p9 = scmp.eq.s32.totalorder %s515_s7, 0 }
 0x15e   : > { %s802_s8 = sshrl.u32 (!%p518_p9), %s838_s3, 1 }
 0x15f   : > { %289 = sbr.rel (%p518_p9) target bundleno = 396 (0x18c), region = 36  ;;  %p519_p10 = scmp.le.s32.totalorder (!%p518_p9), %s802_s8, 0 }
 0x166   : > { %453 = sbr.rel (%p519_p10) target bundleno = 375 (0x177), region = 115  ;;  %s689_s9 = smov (!%p519_p10), %s796_s6  }
 0x167   : > { %s693_s11 = smov (!%p519_p10), %s786_s30   ;;  %s697_s12 = smov (!%p519_p10), 0  }
 0x168   : > { %s701_s14 = smov (!%p519_p10), 0  }
 0x16d LB: >> { %v353_v47 = vld [vmem:[%s695_s11] sm:$0xff]  ;;  %v355_v48 = vld [vmem:[%s695_s11 + $0x8] sm:$0xff]  ;;  %s357_s15 = sadd.s32 1, %s699_s12  ;;  %s347_s14 = sadd.s32 1, %s703_s14   ;;  %s703_s14 = sphi %s701_s14, %s347_s14   ;;  %s699_s12 = sphi %s697_s12, %s698_s12   ;;  %s695_s11 = sphi %s693_s11, %s362_s11   ;;  %s691_s9 = sphi %s689_s9, %s363_s9  }
 0x16e   : >> { %354 = vst [vmem:[%s691_s9] sm:$0xff] %v353_v47  ;;  %356 = vst [vmem:[%s691_s9 + $0x8] sm:$0xff] %v355_v48  ;;  %p358_p11 = scmp.ge.s32.totalorder %s357_s15, %s802_s8  ;;  %p346_p12 = scmp.ge.s32.totalorder %s347_s14, %s802_s8 }
 0x170   : >> { %s840_s15 = smov (%p358_p11, %s357_s15), 0  ;;  %349 = sbr.rel (!%p346_p12) target bundleno = 365 (0x16d), region = 121 }
 0x171   : >> { %s520_s17 = sshll.u32 %s840_s15, 4  ;;  %s698_s12 = smov %s840_s15  }
 0x172   : >> { %s362_s11 = scalar_lea.vmem %s786_s30, %s520_s17 [#allocation2]   ;;  %s363_s9 = scalar_lea.vmem %s796_s6, %s520_s17  }
 0x177 PF: > { %s812_s18 = sand.u32 1, %s838_s3   ;;  %s531_s19 = sshll.u32 %s802_s8, 4 }
 0x178   : > { %s368_s20 = scalar_lea.vmem %s786_s30, %s531_s19 [#allocation2]   ;;  %s370_s21 = scalar_lea.vmem %s796_s6, %s531_s19  }
 0x179   : > { %p525_p13 = scmp.le.s32.totalorder %s812_s18, 0 }
 0x17a   : > { %s705_s22 = smov (!%p525_p13), %s370_s21   ;;  %s709_s23 = smov (!%p525_p13), %s368_s20  }
 0x17b   : > { %467 = sbr.rel (%p525_p13) target bundleno = 396 (0x18c), region = 126  ;;  %s713_s24 = smov (!%p525_p13), 0  }
 0x17c   : > { %s717_s25 = smov (!%p525_p13), 0  }
 0x182 LB: >> { %v380_v49 = vld [vmem:[%s711_s23] sm:$0xff]  ;;  %s382_s26 = sadd.s32 1, %s715_s24  ;;  %s374_s25 = sadd.s32 1, %s719_s25   ;;  %s719_s25 = sphi %s717_s25, %s374_s25   ;;  %s715_s24 = sphi %s713_s24, %s714_s24   ;;  %s711_s23 = sphi %s709_s23, %s387_s23   ;;  %s707_s22 = sphi %s705_s22, %s388_s22  }
 0x183   : >> { %381 = vst [vmem:[%s707_s22] sm:$0xff] %v380_v49  ;;  %p383_p0 = scmp.ge.s32.totalorder %s382_s26, %s812_s18  ;;  %p373_p1 = scmp.ge.s32.totalorder %s374_s25, %s812_s18 }
 0x185   : >> { %s842_s26 = smov (%p383_p0, %s382_s26), 0  ;;  %376 = sbr.rel (!%p373_p1) target bundleno = 386 (0x182), region = 132 }
 0x186   : >> { %s526_s27 = sshll.u32 %s842_s26, 3  ;;  %s714_s24 = smov %s842_s26  }
 0x187   : >> { %s387_s23 = scalar_lea.vmem %s368_s20, %s526_s27 [#allocation2]   ;;  %s388_s22 = scalar_lea.vmem %s370_s21, %s526_s27  }
 0x18c PF: > { %p9_p2 = scmp.ge.s32.totalorder %s753_s13, 4   ;;  %s834_s9 = smov %s683_s10 }
 0x18d   : > { %s835_s10 = smov %s761_s16  ;;  %s836_s11 = smov %s753_s13 }
 0x18e   :  { %11 = sbr.rel (!%p9_p2) target bundleno = 2 (0x2), region = 143 }

</bundles_post_ra>
